<compile_context>
chip_gen: v5e
topology: v5e:2x2
jax: 0.10.0
libtpu: 0.0.40
codegen_flags: <defaults>
</compile_context>

<pallas_src>
import functools
import math

import jax
import jax.numpy as jnp
from jax.experimental import pallas as pl
from jax.experimental.pallas import tpu as pltpu

LN_EPS = 1e-5  # torch.nn.LayerNorm default


def _layernorm(x, gamma, beta):
    # x: (S, H); gamma/beta: (1, H).  Biased variance, matching nn.LayerNorm.
    mean = jnp.mean(x, axis=-1, keepdims=True)
    xc = x - mean
    var = jnp.mean(xc * xc, axis=-1, keepdims=True)
    inv = jax.lax.rsqrt(var + LN_EPS)
    return xc * inv * gamma + beta


def _gelu_exact(x):
    # nn.GELU() default (approximate='none'): 0.5 * x * (1 + erf(x / sqrt(2)))
    return 0.5 * x * (1.0 + jax.lax.erf(x * (1.0 / math.sqrt(2.0))))


def _make_encoder_kernel(num_heads):
    def kernel(x_ref, mb_ref, w1_ref, b1_ref, w2_ref, b2_ref,
               g1_ref, be1_ref, g2_ref, be2_ref, o_ref, h_ref):
        layer = pl.program_id(1)

        # Seed the carried hidden state from the embeddings at layer 0.
        @pl.when(layer == 0)
        def _():
            h_ref[...] = x_ref[0]

        x = h_ref[...]                       # (S, H) f32 carried hidden state
        mask_bias = mb_ref[0]                # (1, S) additive key-mask bias
        S, H = x.shape
        d = H // num_heads
        scale = 1.0 / math.sqrt(d)

        # --- parameter-free multi-head self-attention, batched over heads ---
        xh = jnp.transpose(x.reshape(S, num_heads, d), (1, 0, 2))   # (nh,S,d)
        k_bf = xh.astype(jnp.bfloat16)
        q_bf = (xh * scale).astype(jnp.bfloat16)     # fold 1/sqrt(d) into q
        s = jnp.einsum('hqd,hkd->hqk', q_bf, k_bf,
                       preferred_element_type=jnp.float32)          # (nh,S,S)
        s = s + mask_bias                            # mask over key positions
        s = s - jnp.max(s, axis=-1, keepdims=True)
        p = jnp.exp(s)
        p = p * pl.reciprocal(jnp.sum(p, axis=-1, keepdims=True), approx=True)
        ctx = jnp.einsum('hqk,hkd->hqd', p.astype(jnp.bfloat16), k_bf,
                         preferred_element_type=jnp.float32)        # (nh,S,d)
        attn = jnp.transpose(ctx, (1, 0, 2)).reshape(S, H)

        # --- residual + LayerNorm1 -------------------------------------------
        ln1 = _layernorm(x + attn, g1_ref[0], be1_ref[0])

        # --- feed-forward: Linear -> GELU -> Linear (bf16 MXU, f32 accum) ----
        h1 = jnp.dot(ln1.astype(jnp.bfloat16), w1_ref[0],
                     preferred_element_type=jnp.float32) + b1_ref[0]
        h1 = _gelu_exact(h1)
        ffn = jnp.dot(h1.astype(jnp.bfloat16), w2_ref[0],
                      preferred_element_type=jnp.float32) + b2_ref[0]

        # --- residual + LayerNorm2 -------------------------------------------
        out = _layernorm(ln1 + ffn, g2_ref[0], be2_ref[0])

        h_ref[...] = out          # carry hidden state to the next layer
        o_ref[0] = out            # last layer's value is what lands in HBM

    return kernel


def flash_encoder_pallas(x_emb, mask_bias, stacked, num_heads):
    """All layers fused: x_emb (B,S,H) f32, mask_bias (B,1,S) f32.

    stacked: dict of per-layer params stacked on a leading L axis.
    """
    B, S, H = x_emb.shape
    L, _, I = stacked["w1"].shape
    kernel = _make_encoder_kernel(num_heads)
    batch_map = lambda b, l: (b, 0, 0)   # per-batch blocks, constant over layers
    layer_map = lambda b, l: (l, 0, 0)   # per-layer weight blocks

    return pl.pallas_call(
        kernel,
        out_shape=jax.ShapeDtypeStruct((B, S, H), jnp.float32),
        grid=(B, L),
        in_specs=[
            pl.BlockSpec((1, S, H), batch_map),    # embeddings
            pl.BlockSpec((1, 1, S), batch_map),    # mask bias
            pl.BlockSpec((1, H, I), layer_map),    # w1 (bf16)
            pl.BlockSpec((1, 1, I), layer_map),    # b1
            pl.BlockSpec((1, I, H), layer_map),    # w2 (bf16)
            pl.BlockSpec((1, 1, H), layer_map),    # b2
            pl.BlockSpec((1, 1, H), layer_map),    # ln1 gamma
            pl.BlockSpec((1, 1, H), layer_map),    # ln1 beta
            pl.BlockSpec((1, 1, H), layer_map),    # ln2 gamma
            pl.BlockSpec((1, 1, H), layer_map),    # ln2 beta
        ],
        out_specs=pl.BlockSpec((1, S, H), batch_map),
        scratch_shapes=[pltpu.VMEM((S, H), jnp.float32)],  # carried hidden state
        compiler_params=pltpu.CompilerParams(
            dimension_semantics=("parallel", "arbitrary"),
            vmem_limit_bytes=32 * 1024 * 1024),
    )(x_emb, mask_bias, stacked["w1"], stacked["b1"], stacked["w2"],
      stacked["b2"], stacked["ln1_g"], stacked["ln1_b"],
      stacked["ln2_g"], stacked["ln2_b"])


def init_params(key, vocab_size, max_pos, hidden, intermediate, num_layers):
    keys = jax.random.split(key, 6)
    lim1 = 1.0 / math.sqrt(hidden)          # nn.Linear default uniform bound
    lim2 = 1.0 / math.sqrt(intermediate)
    L = num_layers
    return {
        # nn.Embedding default init: N(0, 1)
        "tok_emb": jax.random.normal(keys[0], (vocab_size, hidden), jnp.float32),
        "pos_emb": jax.random.normal(keys[1], (max_pos, hidden), jnp.float32),
        # Per-layer params, stacked on a leading layer axis.
        "w1": jax.random.uniform(keys[2], (L, hidden, intermediate),
                                 jnp.float32, -lim1, lim1),
        "b1": jax.random.uniform(keys[3], (L, 1, intermediate),
                                 jnp.float32, -lim1, lim1),
        "w2": jax.random.uniform(keys[4], (L, intermediate, hidden),
                                 jnp.float32, -lim2, lim2),
        "b2": jax.random.uniform(keys[5], (L, 1, hidden),
                                 jnp.float32, -lim2, lim2),
        "ln1_g": jnp.ones((L, 1, hidden), jnp.float32),
        "ln1_b": jnp.zeros((L, 1, hidden), jnp.float32),
        "ln2_g": jnp.ones((L, 1, hidden), jnp.float32),
        "ln2_b": jnp.zeros((L, 1, hidden), jnp.float32),
    }


def flash_model_forward(params, input_ids, attention_mask, num_heads):
    B, S = input_ids.shape
    # Embedding lookups are data-dependent gathers: keep them as plain-JAX glue.
    position_ids = jnp.arange(S, dtype=jnp.int32)
    emb = (params["tok_emb"][input_ids]
           + params["pos_emb"][position_ids][None, :, :]).astype(jnp.float32)

    # Additive attention bias from the (B, S) 0/1 mask, broadcast over queries.
    mask_bias = ((1.0 - attention_mask.astype(jnp.float32)) * -1e9)[:, None, :]

    stacked = {
        "w1": params["w1"].astype(jnp.bfloat16),   # bf16 MXU operands
        "w2": params["w2"].astype(jnp.bfloat16),
        "b1": params["b1"],
        "b2": params["b2"],
        "ln1_g": params["ln1_g"], "ln1_b": params["ln1_b"],
        "ln2_g": params["ln2_g"], "ln2_b": params["ln2_b"],
    }
    return flash_encoder_pallas(emb, mask_bias, stacked, num_heads)


if __name__ == "__main__":
    # Small shapes consistent with the module (hidden % heads == 0).
    B, S = 2, 8
    HIDDEN = 32
    NUM_HEADS = 4
    INTERMEDIATE = 128
    NUM_LAYERS = 2
    VOCAB = 100
    MAX_POS = 16

    key = jax.random.PRNGKey(0)
    k_param, k_ids = jax.random.split(key)

    params = init_params(k_param, VOCAB, MAX_POS, HIDDEN, INTERMEDIATE,
                         NUM_LAYERS)

    input_ids = jax.random.randint(k_ids, (B, S), 0, VOCAB, dtype=jnp.int32)
    attention_mask = jnp.ones((B, S), jnp.float32)
    attention_mask = attention_mask.at[1, -2:].set(0.0)  # exercise masking

    fwd = jax.jit(functools.partial(flash_model_forward, num_heads=NUM_HEADS))
    out = fwd(params, input_ids, attention_mask)
    out = jax.block_until_ready(out)

    assert out.shape == (B, S, HIDDEN) and out.dtype == jnp.float32
    assert bool(jnp.all(jnp.isfinite(out)))
    print("KERNEL_OK")
</pallas_src>

<mosaic_0001>
module attributes {stable_mosaic.version = 11 : i64} {
  func.func @kernel(%arg0: i32, %arg1: i32, %arg2: memref<1x8x32xf32, #tpu.memory_space<vmem>>, %arg3: memref<1x1x8xf32, #tpu.memory_space<vmem>>, %arg4: memref<1x32x128xbf16, #tpu.memory_space<vmem>>, %arg5: memref<1x1x128xf32, #tpu.memory_space<vmem>>, %arg6: memref<1x128x32xbf16, #tpu.memory_space<vmem>>, %arg7: memref<1x1x32xf32, #tpu.memory_space<vmem>>, %arg8: memref<1x1x32xf32, #tpu.memory_space<vmem>>, %arg9: memref<1x1x32xf32, #tpu.memory_space<vmem>>, %arg10: memref<1x1x32xf32, #tpu.memory_space<vmem>>, %arg11: memref<1x1x32xf32, #tpu.memory_space<vmem>>, %arg12: memref<1x8x32xf32, #tpu.memory_space<vmem>>, %arg13: memref<8x32xf32, #tpu.memory_space<vmem>>) attributes {dimension_semantics = [#tpu.dimension_semantics<parallel>, #tpu.dimension_semantics<arbitrary>], iteration_bounds = array<i64: 2, 2>, scalar_prefetch = 0 : i64, scratch_operands = 1 : i64, tpu.core_type = #tpu.core_type<tc>, window_params = [{transform_indices = @transform_0, window_bounds = array<i64: 1, 8, 32>}, {transform_indices = @transform_1, window_bounds = array<i64: 1, 1, 8>}, {transform_indices = @transform_2, window_bounds = array<i64: 1, 32, 128>}, {transform_indices = @transform_3, window_bounds = array<i64: 1, 1, 128>}, {transform_indices = @transform_4, window_bounds = array<i64: 1, 128, 32>}, {transform_indices = @transform_5, window_bounds = array<i64: 1, 1, 32>}, {transform_indices = @transform_6, window_bounds = array<i64: 1, 1, 32>}, {transform_indices = @transform_7, window_bounds = array<i64: 1, 1, 32>}, {transform_indices = @transform_8, window_bounds = array<i64: 1, 1, 32>}, {transform_indices = @transform_9, window_bounds = array<i64: 1, 1, 32>}, {transform_indices = @transform_10, window_bounds = array<i64: 1, 8, 32>}]} {
    %c0_i32 = arith.constant 0 : i32
    %0 = arith.cmpi eq, %arg1, %c0_i32 : i32
    %1 = arith.extui %0 : i1 to i32
    %c0_i32_0 = arith.constant 0 : i32
    %2 = arith.cmpi ne, %1, %c0_i32_0 : i32
    scf.if %2 {
      %c0_53 = arith.constant 0 : index
      %c0_54 = arith.constant 0 : index
      %c0_55 = arith.constant 0 : index
      %108 = vector.load %arg2[%c0_53, %c0_54, %c0_55] : memref<1x8x32xf32, #tpu.memory_space<vmem>>, vector<1x8x32xf32>
      %109 = vector.shape_cast %108 : vector<1x8x32xf32> to vector<8x32xf32>
      %c0_56 = arith.constant 0 : index
      %c0_57 = arith.constant 0 : index
      %110 = vector.load %arg13[%c0_56, %c0_57] : memref<8x32xf32, #tpu.memory_space<vmem>>, vector<8x32xf32>
      tpu.vector_store %arg13[%c0_56, %c0_57], %109 {strides = array<i32>} : memref<8x32xf32, #tpu.memory_space<vmem>>, vector<8x32xf32>,
    } else {
    }
    %c0 = arith.constant 0 : index
    %c0_1 = arith.constant 0 : index
    %3 = vector.load %arg13[%c0, %c0_1] : memref<8x32xf32, #tpu.memory_space<vmem>>, vector<8x32xf32>
    %c0_2 = arith.constant 0 : index
    %c0_3 = arith.constant 0 : index
    %c0_4 = arith.constant 0 : index
    %4 = vector.load %arg3[%c0_2, %c0_3, %c0_4] : memref<1x1x8xf32, #tpu.memory_space<vmem>>, vector<1x1x8xf32>
    %5 = vector.shape_cast %4 : vector<1x1x8xf32> to vector<1x8xf32>
    %6 = vector.shape_cast %3 : vector<8x32xf32> to vector<8x4x8xf32>
    %7 = tpu.transpose %6, [1, 0, 2] : vector<8x4x8xf32> -> vector<4x8x8xf32>
    %8 = arith.truncf %7 : vector<4x8x8xf32> to vector<4x8x8xbf16>
    %cst = arith.constant 0.353553385 : f32
    %9 = vector.broadcast %cst : f32 to vector<4x8x8xf32>
    %10 = arith.mulf %7, %9 : vector<4x8x8xf32>
    %11 = arith.truncf %10 : vector<4x8x8xf32> to vector<4x8x8xbf16>
    "tpu.trace_start"() <{level = 10 : i32, message = "hqd,hkd->hqk"}> : () -> ()
    %cst_5 = arith.constant dense<0.000000e+00> : vector<4x8x8xf32>
    %12 = tpu.matmul %11, %8, %cst_5 {dimension_numbers = #tpu.dot_dimension_numbers<[2], [2], [1], [1], [0, 0, 0, 1, 1, 1], [0], [0]>} : vector<4x8x8xbf16>, vector<4x8x8xbf16>, vector<4x8x8xf32> -> vector<4x8x8xf32>
    "tpu.trace_stop"() : () -> ()
    %13 = vector.shape_cast %5 : vector<1x8xf32> to vector<1x1x8xf32>
    %14 = vector.broadcast %13 : vector<1x1x8xf32> to vector<4x8x8xf32>
    %15 = arith.addf %12, %14 : vector<4x8x8xf32>
    %cst_6 = arith.constant dense<0xFF800000> : vector<4x8xf32>
    %16 = vector.multi_reduction <maximumf>, %15, %cst_6 [2] : vector<4x8x8xf32> to vector<4x8xf32>
    %17 = vector.shape_cast %16 : vector<4x8xf32> to vector<4x8x1xf32>
    %18 = vector.broadcast %17 : vector<4x8x1xf32> to vector<4x8x8xf32>
    %19 = arith.subf %15, %18 : vector<4x8x8xf32>
    %20 = math.exp %19 : vector<4x8x8xf32>
    %cst_7 = arith.constant dense<0.000000e+00> : vector<4x8xf32>
    %21 = vector.multi_reduction <add>, %20, %cst_7 [2] : vector<4x8x8xf32> to vector<4x8xf32>
    %22 = vector.shape_cast %21 : vector<4x8xf32> to vector<4x8x1xf32>
    %23 = tpu.reciprocal %22 {approx = true} : vector<4x8x1xf32> -> vector<4x8x1xf32>
    %24 = vector.broadcast %23 : vector<4x8x1xf32> to vector<4x8x8xf32>
    %25 = arith.mulf %20, %24 : vector<4x8x8xf32>
    %26 = arith.truncf %25 : vector<4x8x8xf32> to vector<4x8x8xbf16>
    "tpu.trace_start"() <{level = 10 : i32, message = "hqk,hkd->hqd"}> : () -> ()
    %cst_8 = arith.constant dense<0.000000e+00> : vector<4x8x8xf32>
    %27 = tpu.matmul %26, %8, %cst_8 {dimension_numbers = #tpu.dot_dimension_numbers<[2], [1], [1], [2], [0, 0, 0, 1, 1, 2], [0], [0]>} : vector<4x8x8xbf16>, vector<4x8x8xbf16>, vector<4x8x8xf32> -> vector<4x8x8xf32>
    "tpu.trace_stop"() : () -> ()
    %28 = tpu.transpose %27, [1, 0, 2] : vector<4x8x8xf32> -> vector<8x4x8xf32>
    %29 = vector.shape_cast %28 : vector<8x4x8xf32> to vector<8x32xf32>
    %30 = arith.addf %3, %29 : vector<8x32xf32>
    %c0_9 = arith.constant 0 : index
    %c0_10 = arith.constant 0 : index
    %c0_11 = arith.constant 0 : index
    %31 = vector.load %arg8[%c0_9, %c0_10, %c0_11] : memref<1x1x32xf32, #tpu.memory_space<vmem>>, vector<1x1x32xf32>
    %32 = vector.shape_cast %31 : vector<1x1x32xf32> to vector<1x32xf32>
    %c0_12 = arith.constant 0 : index
    %c0_13 = arith.constant 0 : index
    %c0_14 = arith.constant 0 : index
    %33 = vector.load %arg9[%c0_12, %c0_13, %c0_14] : memref<1x1x32xf32, #tpu.memory_space<vmem>>, vector<1x1x32xf32>
    %34 = vector.shape_cast %33 : vector<1x1x32xf32> to vector<1x32xf32>
    %cst_15 = arith.constant dense<0.000000e+00> : vector<8xf32>
    %35 = vector.multi_reduction <add>, %30, %cst_15 [1] : vector<8x32xf32> to vector<8xf32>
    %36 = vector.shape_cast %35 : vector<8xf32> to vector<8x1xf32>
    %cst_16 = arith.constant 3.200000e+01 : f32
    %37 = vector.broadcast %cst_16 : f32 to vector<8x1xf32>
    %38 = arith.divf %36, %37 : vector<8x1xf32>
    %39 = vector.broadcast %38 : vector<8x1xf32> to vector<8x32xf32>
    %40 = arith.subf %30, %39 : vector<8x32xf32>
    %41 = arith.mulf %40, %40 : vector<8x32xf32>
    %cst_17 = arith.constant dense<0.000000e+00> : vector<8xf32>
    %42 = vector.multi_reduction <add>, %41, %cst_17 [1] : vector<8x32xf32> to vector<8xf32>
    %43 = vector.shape_cast %42 : vector<8xf32> to vector<8x1xf32>
    %cst_18 = arith.constant 3.200000e+01 : f32
    %44 = vector.broadcast %cst_18 : f32 to vector<8x1xf32>
    %45 = arith.divf %43, %44 : vector<8x1xf32>
    %cst_19 = arith.constant 9.99999974E-6 : f32
    %46 = vector.broadcast %cst_19 : f32 to vector<8x1xf32>
    %47 = arith.addf %45, %46 : vector<8x1xf32>
    %48 = math.rsqrt %47 : vector<8x1xf32>
    %49 = vector.broadcast %48 : vector<8x1xf32> to vector<8x32xf32>
    %50 = arith.mulf %40, %49 : vector<8x32xf32>
    %51 = vector.broadcast %32 : vector<1x32xf32> to vector<8x32xf32>
    %52 = arith.mulf %50, %51 : vector<8x32xf32>
    %53 = vector.broadcast %34 : vector<1x32xf32> to vector<8x32xf32>
    %54 = arith.addf %52, %53 : vector<8x32xf32>
    %55 = arith.truncf %54 : vector<8x32xf32> to vector<8x32xbf16>
    %c0_20 = arith.constant 0 : index
    %c0_21 = arith.constant 0 : index
    %c0_22 = arith.constant 0 : index
    %56 = vector.load %arg4[%c0_20, %c0_21, %c0_22] : memref<1x32x128xbf16, #tpu.memory_space<vmem>>, vector<1x32x128xbf16>
    %57 = vector.shape_cast %56 : vector<1x32x128xbf16> to vector<32x128xbf16>
    %cst_23 = arith.constant dense<0.000000e+00> : vector<8x128xf32>
    %58 = tpu.matmul %55, %57, %cst_23 {dimension_numbers = #tpu.dot_dimension_numbers<[1], [0], [0], [1], [0, 0, 1, 1], [], []>} : vector<8x32xbf16>, vector<32x128xbf16>, vector<8x128xf32> -> vector<8x128xf32>
    %c0_24 = arith.constant 0 : index
    %c0_25 = arith.constant 0 : index
    %c0_26 = arith.constant 0 : index
    %59 = vector.load %arg5[%c0_24, %c0_25, %c0_26] : memref<1x1x128xf32, #tpu.memory_space<vmem>>, vector<1x1x128xf32>
    %60 = vector.shape_cast %59 : vector<1x1x128xf32> to vector<1x128xf32>
    %61 = vector.broadcast %60 : vector<1x128xf32> to vector<8x128xf32>
    %62 = arith.addf %58, %61 : vector<8x128xf32>
    %cst_27 = arith.constant 5.000000e-01 : f32
    %63 = vector.broadcast %cst_27 : f32 to vector<8x128xf32>
    %64 = arith.mulf %63, %62 : vector<8x128xf32>
    %cst_28 = arith.constant 0.707106769 : f32
    %65 = vector.broadcast %cst_28 : f32 to vector<8x128xf32>
    %66 = arith.mulf %62, %65 : vector<8x128xf32>
    %67 = math.erf %66 : vector<8x128xf32>
    %cst_29 = arith.constant 1.000000e+00 : f32
    %68 = vector.broadcast %cst_29 : f32 to vector<8x128xf32>
    %69 = arith.addf %68, %67 : vector<8x128xf32>
    %70 = arith.mulf %64, %69 : vector<8x128xf32>
    %71 = arith.truncf %70 : vector<8x128xf32> to vector<8x128xbf16>
    %c0_30 = arith.constant 0 : index
    %c0_31 = arith.constant 0 : index
    %c0_32 = arith.constant 0 : index
    %72 = vector.load %arg6[%c0_30, %c0_31, %c0_32] : memref<1x128x32xbf16, #tpu.memory_space<vmem>>, vector<1x128x32xbf16>
    %73 = vector.shape_cast %72 : vector<1x128x32xbf16> to vector<128x32xbf16>
    %cst_33 = arith.constant dense<0.000000e+00> : vector<8x32xf32>
    %74 = tpu.matmul %71, %73, %cst_33 {dimension_numbers = #tpu.dot_dimension_numbers<[1], [0], [0], [1], [0, 0, 1, 1], [], []>} : vector<8x128xbf16>, vector<128x32xbf16>, vector<8x32xf32> -> vector<8x32xf32>
    %c0_34 = arith.constant 0 : index
    %c0_35 = arith.constant 0 : index
    %c0_36 = arith.constant 0 : index
    %75 = vector.load %arg7[%c0_34, %c0_35, %c0_36] : memref<1x1x32xf32, #tpu.memory_space<vmem>>, vector<1x1x32xf32>
    %76 = vector.shape_cast %75 : vector<1x1x32xf32> to vector<1x32xf32>
    %77 = vector.broadcast %76 : vector<1x32xf32> to vector<8x32xf32>
    %78 = arith.addf %74, %77 : vector<8x32xf32>
    %79 = arith.addf %54, %78 : vector<8x32xf32>
    %c0_37 = arith.constant 0 : index
    %c0_38 = arith.constant 0 : index
    %c0_39 = arith.constant 0 : index
    %80 = vector.load %arg10[%c0_37, %c0_38, %c0_39] : memref<1x1x32xf32, #tpu.memory_space<vmem>>, vector<1x1x32xf32>
    %81 = vector.shape_cast %80 : vector<1x1x32xf32> to vector<1x32xf32>
    %c0_40 = arith.constant 0 : index
    %c0_41 = arith.constant 0 : index
    %c0_42 = arith.constant 0 : index
    %82 = vector.load %arg11[%c0_40, %c0_41, %c0_42] : memref<1x1x32xf32, #tpu.memory_space<vmem>>, vector<1x1x32xf32>
    %83 = vector.shape_cast %82 : vector<1x1x32xf32> to vector<1x32xf32>
    %cst_43 = arith.constant dense<0.000000e+00> : vector<8xf32>
    %84 = vector.multi_reduction <add>, %79, %cst_43 [1] : vector<8x32xf32> to vector<8xf32>
    %85 = vector.shape_cast %84 : vector<8xf32> to vector<8x1xf32>
    %cst_44 = arith.constant 3.200000e+01 : f32
    %86 = vector.broadcast %cst_44 : f32 to vector<8x1xf32>
    %87 = arith.divf %85, %86 : vector<8x1xf32>
    %88 = vector.broadcast %87 : vector<8x1xf32> to vector<8x32xf32>
    %89 = arith.subf %79, %88 : vector<8x32xf32>
    %90 = arith.mulf %89, %89 : vector<8x32xf32>
    %cst_45 = arith.constant dense<0.000000e+00> : vector<8xf32>
    %91 = vector.multi_reduction <add>, %90, %cst_45 [1] : vector<8x32xf32> to vector<8xf32>
    %92 = vector.shape_cast %91 : vector<8xf32> to vector<8x1xf32>
    %cst_46 = arith.constant 3.200000e+01 : f32
    %93 = vector.broadcast %cst_46 : f32 to vector<8x1xf32>
    %94 = arith.divf %92, %93 : vector<8x1xf32>
    %cst_47 = arith.constant 9.99999974E-6 : f32
    %95 = vector.broadcast %cst_47 : f32 to vector<8x1xf32>
    %96 = arith.addf %94, %95 : vector<8x1xf32>
    %97 = math.rsqrt %96 : vector<8x1xf32>
    %98 = vector.broadcast %97 : vector<8x1xf32> to vector<8x32xf32>
    %99 = arith.mulf %89, %98 : vector<8x32xf32>
    %100 = vector.broadcast %81 : vector<1x32xf32> to vector<8x32xf32>
    %101 = arith.mulf %99, %100 : vector<8x32xf32>
    %102 = vector.broadcast %83 : vector<1x32xf32> to vector<8x32xf32>
    %103 = arith.addf %101, %102 : vector<8x32xf32>
    %c0_48 = arith.constant 0 : index
    %c0_49 = arith.constant 0 : index
    %104 = vector.load %arg13[%c0_48, %c0_49] : memref<8x32xf32, #tpu.memory_space<vmem>>, vector<8x32xf32>
    tpu.vector_store %arg13[%c0_48, %c0_49], %103 {strides = array<i32>} : memref<8x32xf32, #tpu.memory_space<vmem>>, vector<8x32xf32>,
    %c0_50 = arith.constant 0 : index
    %c0_51 = arith.constant 0 : index
    %c0_52 = arith.constant 0 : index
    %105 = vector.load %arg12[%c0_50, %c0_51, %c0_52] : memref<1x8x32xf32, #tpu.memory_space<vmem>>, vector<1x8x32xf32>
    %106 = vector.shape_cast %105 : vector<1x8x32xf32> to vector<8x32xf32>
    %107 = vector.shape_cast %103 : vector<8x32xf32> to vector<1x8x32xf32>
    tpu.vector_store %arg12[%c0_50, %c0_51, %c0_52], %107 {strides = array<i32>} : memref<1x8x32xf32, #tpu.memory_space<vmem>>, vector<1x8x32xf32>,
    return
  }
  func.func @transform_0(%arg0: i32, %arg1: i32) -> (i32, i32, i32) {
    %c0_i32 = arith.constant 0 : i32
    %c0_i32_0 = arith.constant 0 : i32
    %c0_i32_1 = arith.constant 0 : i32
    return %arg0, %c0_i32, %c0_i32_0 : i32, i32, i32
  }
  func.func @transform_1(%arg0: i32, %arg1: i32) -> (i32, i32, i32) {
    %c0_i32 = arith.constant 0 : i32
    %c0_i32_0 = arith.constant 0 : i32
    %c0_i32_1 = arith.constant 0 : i32
    return %arg0, %c0_i32, %c0_i32_0 : i32, i32, i32
  }
  func.func @transform_2(%arg0: i32, %arg1: i32) -> (i32, i32, i32) {
    %c0_i32 = arith.constant 0 : i32
    %c0_i32_0 = arith.constant 0 : i32
    %c0_i32_1 = arith.constant 0 : i32
    return %arg1, %c0_i32, %c0_i32_0 : i32, i32, i32
  }
  func.func @transform_3(%arg0: i32, %arg1: i32) -> (i32, i32, i32) {
    %c0_i32 = arith.constant 0 : i32
    %c0_i32_0 = arith.constant 0 : i32
    %c0_i32_1 = arith.constant 0 : i32
    return %arg1, %c0_i32, %c0_i32_0 : i32, i32, i32
  }
  func.func @transform_4(%arg0: i32, %arg1: i32) -> (i32, i32, i32) {
    %c0_i32 = arith.constant 0 : i32
    %c0_i32_0 = arith.constant 0 : i32
    %c0_i32_1 = arith.constant 0 : i32
    return %arg1, %c0_i32, %c0_i32_0 : i32, i32, i32
  }
  func.func @transform_5(%arg0: i32, %arg1: i32) -> (i32, i32, i32) {
    %c0_i32 = arith.constant 0 : i32
    %c0_i32_0 = arith.constant 0 : i32
    %c0_i32_1 = arith.constant 0 : i32
    return %arg1, %c0_i32, %c0_i32_0 : i32, i32, i32
  }
  func.func @transform_6(%arg0: i32, %arg1: i32) -> (i32, i32, i32) {
    %c0_i32 = arith.constant 0 : i32
    %c0_i32_0 = arith.constant 0 : i32
    %c0_i32_1 = arith.constant 0 : i32
    return %arg1, %c0_i32, %c0_i32_0 : i32, i32, i32
  }
  func.func @transform_7(%arg0: i32, %arg1: i32) -> (i32, i32, i32) {
    %c0_i32 = arith.constant 0 : i32
    %c0_i32_0 = arith.constant 0 : i32
    %c0_i32_1 = arith.constant 0 : i32
    return %arg1, %c0_i32, %c0_i32_0 : i32, i32, i32
  }
  func.func @transform_8(%arg0: i32, %arg1: i32) -> (i32, i32, i32) {
    %c0_i32 = arith.constant 0 : i32
    %c0_i32_0 = arith.constant 0 : i32
    %c0_i32_1 = arith.constant 0 : i32
    return %arg1, %c0_i32, %c0_i32_0 : i32, i32, i32
  }
  func.func @transform_9(%arg0: i32, %arg1: i32) -> (i32, i32, i32) {
    %c0_i32 = arith.constant 0 : i32
    %c0_i32_0 = arith.constant 0 : i32
    %c0_i32_1 = arith.constant 0 : i32
    return %arg1, %c0_i32, %c0_i32_0 : i32, i32, i32
  }
  func.func @transform_10(%arg0: i32, %arg1: i32) -> (i32, i32, i32) {
    %c0_i32 = arith.constant 0 : i32
    %c0_i32_0 = arith.constant 0 : i32
    %c0_i32_1 = arith.constant 0 : i32
    return %arg0, %c0_i32, %c0_i32_0 : i32, i32, i32
  }
}

</mosaic_0001>

<bundles_post_ra>
// kernel: flash_model_forward.1
= control target key start
LH: loop header
LB: loop body
LE: loop exit
PB: predicated region body
PF: predicated region fallthrough
CT: control target
= control target key end

     0   :  { %s2093_s0 = inlined_call_operand.vmem [shape: f32[2,8,32], index: 0, kind: input, shape index: {}]   ;;  %s2094_s1 = inlined_call_operand.vmem [shape: f32[2,1,8], index: 1, kind: input, shape index: {}]   ;;  %s2095_s2 = inlined_call_operand.vmem [shape: bf16[2,32,128], index: 2, kind: input, shape index: {}]   ;;  %s2096_s3 = inlined_call_operand.vmem [shape: f32[2,1,128], index: 3, kind: input, shape index: {}]   ;;  %s2097_s4 = inlined_call_operand.vmem [shape: bf16[2,128,32], index: 4, kind: input, shape index: {}]   ;;  %s2098_s5 = inlined_call_operand.vmem [shape: f32[2,1,32], index: 5, kind: input, shape index: {}]   ;;  %s2099_s6 = inlined_call_operand.vmem [shape: f32[2,1,32], index: 6, kind: input, shape index: {}]   ;;  %s2100_s7 = inlined_call_operand.vmem [shape: f32[2,1,32], index: 7, kind: input, shape index: {}]   ;;  %s2101_s8 = inlined_call_operand.vmem [shape: f32[2,1,32], index: 8, kind: input, shape index: {}]   ;;  %s2102_s9 = inlined_call_operand.vmem [shape: f32[2,1,32], index: 9, kind: input, shape index: {}]   ;;  %s2103_s10 = inlined_call_operand.hbm [shape: f32[2,8,32], index: 10, kind: output, shape index: {}]  }
   0x1   :  { %2118 = sst [smem:[#allocation18_spill]] %s2093_s0 }
   0x2   :  { %2119 = sst [smem:[#allocation19_spill]] %s2095_s2 }
   0x3   :  { %2120 = sst [smem:[#allocation20_spill]] %s2103_s10 }
   0x4   :  { %15 = vsyncpa [#allocation4], 0 }
   0x5   :  { %17 = vsyncpa [#allocation4 + $0x1], 0  ;;  %s1737_s13 = smov 0   ;;  %s1739_s14 = smov 0  }
   0x6   :  { %s1741_s15 = smov 0   ;;  %s1743_s16 = smov 0  }
   0x7   :  { %s1745_s17 = smov 0   ;;  %s1747_s18 = smov 0  }
   0x8   :  { %s1749_s19 = smov 0   ;;  %s1751_s20 = smov 0  }
   0x9 LB: > { %2121 = sst [smem:[#allocation6_spill]] %s1643_s13  ;;  %s1388_s21 = sadd.s32 4294967295, %s1671_s20   ;;  %s1671_s20 = sphi %s1751_s20, %s23_s20   ;;  %s1667_s19 = sphi %s1749_s19, %s2154_s19   ;;  %s1663_s18 = sphi %s1747_s18, %s2153_s18   ;;  %s1659_s17 = sphi %s1745_s17, %s2152_s17   ;;  %s1655_s16 = sphi %s1743_s16, %s2151_s16   ;;  %s1651_s15 = sphi %s1741_s15, %s2150_s15   ;;  %s1647_s14 = sphi %s1739_s14, %s2149_s14   ;;  %s1643_s13 = sphi %s1737_s13, %s2148_s13  }
   0xa   : > { %2122 = sst [smem:[#allocation7_spill]] %s1647_s14  ;;  %s1389_s22 = sadd.s32 4294967294, %s1671_s20  }
   0xb   : > { %2123 = sst [smem:[#allocation8_spill]] %s1651_s15  ;;  %s32_s23 = sadd.s32 1, %s1663_s18 }
   0xc   : > { %2124 = sst [smem:[#allocation9_spill]] %s1659_s17  ;;  %p33_p0 = scmp.ge.s32.totalorder %s32_s23, 2 }
   0xd   : > { %2125 = sst [smem:[#allocation10_spill]] %s1663_s18  ;;  %s35_s24 = sadd.s32 1, %s1667_s19 }
   0xe   : > { %2126 = sst [smem:[#allocation11_spill]] %s1667_s19  ;;  %p312_p1 = scmp.ne.s32.totalorder %s1651_s15, %s1647_s14 }
   0xf   : > { %2127 = sst [smem:[#allocation12_spill]] %s1671_s20  ;;  %p313_p2 = scmp.eq.s32.totalorder %s1388_s21, 3 }
  0x10   : > { %s2156_s23 = smov (%p33_p0, %s32_s23), 0  ;;  %s2158_s24 = smov (!%p33_p0, %s35_s24), %s1667_s19 }
  0x11   : > { %2128 = sst [smem:[#allocation13_spill]] %s2156_s23  ;;  %p1786_p3 = por %p313_p2, %p312_p1 }
  0x12   : > { %p318_p4 = scmp.ne.s32.totalorder %s1647_s14, %s1643_s13  ;;  %p37_p5 = scmp.ge.s32.totalorder %s2158_s24, 2 }
  0x13   : > { %s2129_s25 = scalar_select %p1786_p3, 1, 0 }
  0x14   : > { %p319_p6 = scmp.eq.s32.totalorder %s1389_s22, 3  ;;  %p1392_p7 = scmp.ge.s32.totalorder %s1671_s20, 1 }
  0x15   : > { %2130 = sst [smem:[#allocation14_spill]] %s2129_s25  ;;  %p402_p8 = scmp.lt.s32.totalorder %s1671_s20, 5 }
  0x16   : > { %s2160_s24 = smov (%p37_p5, %s2158_s24), 0  ;;  %p1796_p9 = por %p319_p6, %p318_p4 }
  0x17   : > { %2131 = sst [smem:[#allocation15_spill]] %s2160_s24  ;;  %p403_p10 = pnand %p1392_p7, %p402_p8 }
  0x18   : > { %s2132_s26 = scalar_select %p1796_p9, 1, 0 }
  0x19   : > { %s299_s27 = ssub.s32 %s1667_s19, %s2160_s24  ;;  %s302_s28 = sadd.s32 1, %s1651_s15 }
  0x1a   : > { %2133 = sst [smem:[#allocation16_spill]] %s2132_s26  ;;  %p300_p11 = scmp.eq.s32.totalorder %s299_s27, 0 }
  0x1b   : > { %406 = sbr.rel (%p403_p10) target bundleno = 1755 (0x6db), region = 60  ;;  %s2104_s30 = sand.u32 (!%p403_p10), 1, %s1647_s14  }
  0x1c   : > { %s1804_s29 = scalar_select %p300_p11, %s1651_s15, %s302_s28  }
  0x1d   : > { %p470_p12 = scmp.lt.s32.totalorder (!%p403_p10), %s1659_s17, 1  ;;  %s1810_s11 = sshll.u32 (!%p403_p10), %s2104_s30, 3 }
  0x1e   : > { %2134 = sst [smem:[#allocation17_spill]] %s1804_s29  ;;  %p477_p13 = scmp.lt.s32.totalorder (!%p403_p10), %s1655_s16, 1 }
  0x1f   : > { %s2135_s0 = sld [smem:[#allocation18_spill]] (!%p403_p10)  ;;  %s469_s27 = scalar_lea.vmem (!%p403_p10), [#allocation3], %s1810_s11 }
  0x20   : > { %s1814_s12 = scalar_select %p470_p12, %s1659_s17, 1 }
  0x21   : > { %s1817_s21 = scalar_select %p477_p13, %s1655_s16, 1 }
  0x22   : > { %s1394_s22 = sshll.u32 %s1814_s12, 3  ;;  %s2136_s2 = sld [smem:[#allocation19_spill]] }
  0x23   : > { %s1454_s18 = sshll.u32 %s1817_s21, 4  ;;  %s1455_s10 = sshll.u32 %s1817_s21, 6 }
  0x24   : > { %s1845_s23 = scalar_lea.vmem %s2097_s4, %s1455_s10  ;;  %s495_s15 = scalar_lea.vmem %s2099_s6, %s1817_s21 }
  0x25   : > { %s473_s19 = scalar_lea.vmem %s2135_s0, %s1394_s22  ;;  %s498_s0 = scalar_lea.vmem %s2100_s7, %s1817_s21 }
  0x26   : > { %s501_s25 = scalar_lea.vmem %s2101_s8, %s1817_s21  ;;  %s504_s17 = scalar_lea.vmem %s2102_s9, %s1817_s21 }
  0x27   : > { %p1399_p0 = scmp.ne.s32.totalorder %s1655_s16, 0 }
  0x28   : > { %s1831_s26 = scalar_lea.vmem %s2136_s2, %s1454_s18 }
  0x29   : > { %509 = sbr.rel (%p1399_p0) target bundleno = 48 (0x30), region = 64 }
  0x2e   : > { %v510_v0 = vld [vmem:[%s473_s19] sm:$0xff]  ;;  %vm511_vm0 = vcmask 261120  }
  0x2f   : > { %512 = vst.msk [vmem:[#allocation2] sm:$0xff] %vm511_vm0, %v510_v0 }
  0x30 PF: > { %s1673_s10 = smov 112   ;;  %s1674_s30 = smov 120   ;;  %v1676_v2 = vmov 1983009808   ;;  %vm526_vm1 = vcmask 1047556   ;;  %vm651_vm2 = vcmask 64512  }
  0x31   : > { %s1675_s28 = smov 104   ;;  %v531_v3 = vunpack.c.l.s4 %v1676_v2  ;;  %v1677_v12 = vmov 1934713408   ;;  %vm779_vm3 = vcmask 1043456   ;;  %s2137_s19 = scalar_lea.vmem %s2094_s1, %s1814_s12  ;;  %vm972_vm4 = vcmask 130048  }
  0x32   : > { %v555_v13 = vunpack.c.l.s4 %v1677_v12  ;;  %s1678_s12 = smov 24   ;;  %s1679_s24 = smov 16   ;;  %vm974_vm5 = vcmask 195584   ;;  %vm979_vm6 = vcmask 261120  }
  0x33   : > { %v1871_v7 = vunpack.c.0.s8 %v531_v3  ;;  %s1680_s22 = smov 8   ;;  %s2138_s14 = scalar_lea.vmem %s2096_s3, %s1817_s21 }
  0x34   : > { %v1878_v17 = vunpack.c.0.s8 %v555_v13  ;;  %s2141_s2 = sld [smem:[#allocation7_spill]] }
  0x36   : > { %v1865_v1 = vld [vmem:[#allocation2] sm:$0xff] }
  0x37   : > { %519 = vrot.lane.b32.xlu0 %v1865_v1, %s1673_s10  ;;  %516 = vrot.lane.b32.xlu1 %v1865_v1, %s1674_s30  ;;  %v528_v4 = vrot.slane %v1865_v1, 4  ;;  %s2139_s10 = scalar_lea.vmem %s2098_s5, %s1817_s21  ;;  %s2140_s30 = sld [smem:[#allocation9_spill]] }
  0x3f   : > { %522 = vrot.lane.b32.xlu0 %v1865_v1, %s1675_s28  ;;  %s1451_s28 = sshll.u32 %s2140_s30, 3 }
  0xa9   : > { %v520_v5 = vpop.permute.xlu0 %519  ;;  %v517_v8 = vpop.permute.xlu1 %516 }
  0xaa   : > { %v525_v6 = vrot.slane %v520_v5, 4  ;;  %v529_v9 = vsel %vm526_vm1, %v520_v5, %v528_v4  ;;  %v540_v11 = vrot.slane %v517_v8, 4 }
  0xab   : > { %v537_v14 = vperm.slane %v529_v9, %v1871_v7 }
  0xac   : > { %v527_v10 = vsel %vm526_vm1, %v525_v6, %v1865_v1 }
  0xad   : > { %v533_v15 = vperm.slane %v527_v10, %v1871_v7  ;;  %v564_v20 = vrot.slane %v537_v14, 4 }
  0xaf   : > { %v552_v23 = vrot.slane %v533_v15, 4 }
  0xb1   : > { %v523_v16 = vpop.permute.xlu0 %522 }
  0xb2   : > { %v538_v18 = vrot.slane %v523_v16, 4  ;;  %v541_v19 = vsel %vm526_vm1, %v523_v16, %v540_v11 }
  0xb3   : > { %v549_v21 = vperm.slane %v541_v19, %v1871_v7 }
  0xb4   : > { %v539_v22 = vsel %vm526_vm1, %v538_v18, %v517_v8 }
  0xb5   : > { %v545_v24 = vperm.slane %v539_v22, %v1871_v7  ;;  %v562_v25 = vrot.slane %v549_v21, 4  ;;  %v565_v26 = vsel %vm526_vm1, %v549_v21, %v564_v20 }
  0xb6   : > { %v573_v27 = vperm.slane %v565_v26, %v1878_v17 }
  0xb7   : > { %v550_v28 = vrot.slane %v545_v24, 4  ;;  %v553_v29 = vsel %vm526_vm1, %v545_v24, %v552_v23  ;;  %v563_v30 = vsel %vm526_vm1, %v562_v25, %v537_v14 }
  0xb8   : > { %v561_v31 = vperm.slane %v553_v29, %v1878_v17  ;;  %v569_v32 = vperm.slane %v563_v30, %v1878_v17  ;;  %v580_v33 = vrot.slane %v573_v27, 4 }
  0xb9   : > { %v551_v34 = vsel %vm526_vm1, %v550_v28, %v533_v15 }
  0xba   : > { %v557_v35 = vperm.slane %v551_v34, %v1878_v17  ;;  %v576_v36 = vrot.slane %v561_v31, 4  ;;  %v578_v37 = vrot.slane %v569_v32, 4  ;;  %v581_v38 = vsel %vm526_vm1, 0.0, %v580_v33 }
  0xbb   : > { %v593_v39 = vsel %vm526_vm1, %v580_v33, %v569_v32  ;;  %v598_v40 = vrot.slane %v581_v38, 4  ;;  %v1546_v33 = vld [vmem:[%s2137_s19] ss:$0 sm:$0xff] }
  0xbc   : > { %v574_v41 = vrot.slane %v557_v35, 4  ;;  %v577_v42 = vsel %vm526_vm1, 0.0, %v576_v36  ;;  %v579_v43 = vsel %vm526_vm1, 0.0, %v578_v37  ;;  %v597_v44 = vperm.slane %v593_v39, %v1871_v7 }
  0xbd   : > { %v587_v45 = vrot.slane %v577_v42, 4  ;;  %v599_v46 = vsel %vm526_vm1, %v598_v40, %v579_v43  ;;  %v582_v47 = vsel %vm526_vm1, %v576_v36, %v557_v35 }
  0xbe   : > { %v603_v48 = vperm.slane %v599_v46, %v1871_v7  ;;  %v575_v49 = vsel %vm526_vm1, 0.0, %v574_v41  ;;  %v586_v50 = vperm.slane %v582_v47, %v1871_v7  ;;  %v618_v51 = vrot.slane %v597_v44, 4 }
  0xbf   : > { %v588_v52 = vsel %vm526_vm1, %v587_v45, %v575_v49 }
  0xc0   : > { %v592_v53 = vperm.slane %v588_v52, %v1871_v7  ;;  %v616_v54 = vrot.slane %v603_v48, 4  ;;  %v606_v55 = vrot.slane %v586_v50, 4  ;;  %v619_v56 = vsel %vm526_vm1, %v603_v48, %v618_v51 }
  0xc1   : > { %v627_v57 = vperm.slane %v619_v56, %v1878_v17 }
  0xc2   : > { %v604_v58 = vrot.slane %v592_v53, 4  ;;  %v617_v59 = vsel %vm526_vm1, %v616_v54, %v597_v44  ;;  %v607_v60 = vsel %vm526_vm1, %v592_v53, %v606_v55 }
  0xc3   : > { %v623_v61 = vperm.slane %v617_v59, %v1878_v17  ;;  %v615_v62 = vperm.slane %v607_v60, %v1878_v17  ;;  %v632_v63 = vrot.slane %v627_v57, 4 }
  0xc4   : > { %v605_v0 = vsel %vm526_vm1, %v604_v58, %v586_v50 }
  0xc5   : > { %v611_v2 = vperm.slane %v605_v0, %v1878_v17  ;;  %v628_v3 = vrot.slane %v623_v61, 4  ;;  %v634_v4 = vrot.slane %v615_v62, 4  ;;  %v633_v5 = vsel %vm526_vm1, %v632_v63, %v615_v62 }
  0xc6   : > { %v638_v13 = vpack.c.bf16 %v633_v5, %v633_v5  ;;  %v642_v30 = vmul.f32 0.35355338, %v633_v5 }
  0xc7   : > { %v629_v6 = vsel %vm526_vm1, %v628_v3, %v611_v2  ;;  %v635_v8 = vsel %vm526_vm1, %v627_v57, %v634_v4  ;;  %v630_v9 = vrot.slane %v611_v2, 4 }
  0xc8   : > { %v636_v10 = vpack.c.bf16 %v629_v6, %v629_v6  ;;  %v639_v11 = vpack.c.bf16 %v635_v8, %v635_v8  ;;  %v640_v20 = vmul.f32 0.35355338, %v629_v6  ;;  %v643_v21 = vmul.f32 0.35355338, %v635_v8 }
  0xc9   : > { %v631_v12 = vsel %vm526_vm1, %v623_v61, %v630_v9  ;;  %v694_v24 = vsel %vm651_vm2, %v638_v13, 0  ;;  %v816_v29 = vsel %vm779_vm3, %v638_v13, 0  ;;  %v646_v31 = vpack.c.bf16 %v642_v30, %v642_v30 }
  0xca   : > { %v656_v14 = vsel %vm651_vm2, %v636_v10, 0  ;;  %v713_v15 = vsel %vm651_vm2, %v639_v11, 0  ;;  %v780_v16 = vsel %vm779_vm3, %v636_v10, 0  ;;  %v834_v18 = vsel %vm779_vm3, %v639_v11, 0 }
  0xcb   : > { %665 = vmatpush.bf16.xpose.msra.mxu0 %v656_v14  ;;  %722 = vmatpush.bf16.xpose.msra.mxu3 %v713_v15  ;;  %v637_v19 = vpack.c.bf16 %v631_v12, %v631_v12  ;;  %v641_v25 = vmul.f32 0.35355338, %v631_v12  ;;  %v644_v26 = vpack.c.bf16 %v640_v20, %v640_v20  ;;  %v647_v27 = vpack.c.bf16 %v643_v21, %v643_v21 }
  0xcd   : > { %v675_v22 = vsel %vm651_vm2, %v637_v19, 0  ;;  %v798_v23 = vsel %vm779_vm3, %v637_v19, 0  ;;  %v645_v28 = vpack.c.bf16 %v641_v25, %v641_v25 }
  0xce   : > { %684 = vmatpush.bf16.xpose.msra.mxu2 %v675_v22  ;;  %807 = vmatpush.bf16.msra.mxu1 %v798_v23 }
  0xd2   : > { %1400 = vmatmul.msk.bf16.vlgmr.msra.gmra.mxu0 %vm651_vm2, %v644_v26  ;;  %1403 = vmatmul.msk.bf16.vlgmr.msra.gmra.mxu3 %vm651_vm2, %v647_v27 }
  0xd3   : > { %789 = vmatpush.bf16.msrb.mxu0 %v780_v16  ;;  %843 = vmatpush.bf16.msrb.mxu3 %v834_v18 }
  0xd5   : > { %1401 = vmatmul.msk.bf16.vlgmr.msra.gmra.mxu2 %vm651_vm2, %v645_v28 }
  0xd6   : > { %703 = vmatpush.bf16.xpose.msrb.mxu2 %v694_v24 }
  0xde   : > { %825 = vmatpush.bf16.msra.mxu2 %v816_v29 }
  0xe5   : > { %1402 = vmatmul.msk.bf16.vlgmr.msrb.gmra.mxu2 %vm651_vm2, %v646_v31 }
 0x14f   : > { %v667_v32 = vpop.f32.mrf.mxu0 }
 0x150   : > { %v668_v41 = vadd.f32 %v1546_v33, %v667_v32 }
 0x152   : > { %v728_v44 = vsel %vm651_vm2, %v668_v41, -inf }
 0x155   : > { %v724_v34 = vpop.f32.mrf.mxu3 }
 0x156   : > { %v725_v35 = vadd.f32 %v1546_v33, %v724_v34 }
 0x157   : > { %v669_v36 = vpop.f32.mrf.mxu0 }
 0x158   : > { %v686_v37 = vpop.f32.mrf.mxu2  ;;  %v737_v38 = vsel %vm651_vm2, %v725_v35, -inf }
 0x159   : > { %v687_v39 = vadd.f32 %v1546_v33, %v686_v37  ;;  %738 = vmax.xlane.f32.xlu2 %v737_v38 }
 0x15b   : > { %v731_v40 = vsel %vm651_vm2, %v687_v39, -inf }
 0x15c   : > { %732 = vmax.xlane.f32.xlu0 %v731_v40 }
 0x15d   : > { %v726_v42 = vpop.f32.mrf.mxu3 }
 0x160   : > { %v688_v43 = vpop.f32.mrf.mxu2 }
 0x161   : > { %729 = vmax.xlane.f32.xlu2 %v728_v44 }
 0x168   : > { %v705_v45 = vpop.f32.mrf.mxu2 }
 0x169   : > { %v706_v46 = vadd.f32 %v1546_v33, %v705_v45 }
 0x16b   : > { %v734_v47 = vsel %vm651_vm2, %v706_v46, -inf }
 0x16c   : > { %735 = vmax.xlane.f32.xlu1 %v734_v47 }
 0x170   : > { %v707_v48 = vpop.f32.mrf.mxu2 }
 0x1cc   : > { %v739_v49 = vpop.xlane.xlu2 %738 }
 0x1cd   : > { %v743_v50 = vsub.f32 %v725_v35, %v739_v49 }
 0x1cf   : > { %v750_v51 = vmul.f32 1.442695, %v743_v50  ;;  %v733_v60 = vpop.xlane.xlu0 %732 }
 0x1d0   : > { %v741_v62 = vsub.f32 %v687_v39, %v733_v60 }
 0x1d1   : > { %1553 = vpow2.f32 %v750_v51 }
 0x1d2   : > { %v746_v0 = vmul.f32 1.442695, %v741_v62 }
 0x1d4   : > { %v730_v54 = vpop.xlane.xlu2 %729 }
 0x1d5   : > { %v740_v57 = vsub.f32 %v668_v41, %v730_v54 }
 0x1d7   : > { %v1554_v52 = vpop.eup %1553  ;;  %v744_v59 = vmul.f32 1.442695, %v740_v57 }
 0x1d8   : > { %v761_v53 = vsel %vm651_vm2, %v1554_v52, 0.0 }
 0x1d9   : > { %762 = vadd.xlane.f32.xlu2 %v761_v53 }
 0x1df   : > { %v736_v55 = vpop.xlane.xlu1 %735 }
 0x1e0   : > { %v742_v56 = vsub.f32 %v706_v46, %v736_v55 }
 0x1e2   : > { %v748_v58 = vmul.f32 1.442695, %v742_v56 }
 0x1e4   : > { %1555 = vpow2.f32 %v748_v58 }
 0x1e5   : > { %1557 = vpow2.f32 %v744_v59 }
 0x1e6   : > { %1559 = vpow2.f32 %v746_v0 }
 0x1ea   : > { %v1556_v61 = vpop.eup %1555 }
 0x1eb   : > { %v758_v63 = vsel %vm651_vm2, %v1556_v61, 0.0  ;;  %v1558_v2 = vpop.eup %1557 }
 0x1ec   : > { %759 = vadd.xlane.f32.xlu2 %v758_v63  ;;  %v752_v3 = vsel %vm651_vm2, %v1558_v2, 0.0  ;;  %v1560_v4 = vpop.eup %1559 }
 0x1ed   : > { %v755_v5 = vsel %vm651_vm2, %v1560_v4, 0.0 }
 0x1f4   : > { %753 = vadd.xlane.f32.xlu2 %v752_v3 }
 0x1fc   : > { %756 = vadd.xlane.f32.xlu2 %v755_v5 }
 0x24c   : > { %v763_v6 = vpop.xlane.xlu2 %762 }
 0x24d   : > { %1561 = vrcp.f32 %v763_v6 }
 0x253   : > { %v1562_v8 = vpop.eup %1561 }
 0x254   : > { %v771_v9 = vmul.f32 %v1562_v8, %v1554_v52 }
 0x256   : > { %v775_v10 = vpack.c.bf16 %v771_v9, %v771_v9 }
 0x258   : > { %1407 = vmatmul.msk.bf16.vlgmr.msrb.gmra.mxu3 %vm651_vm2, %v775_v10 }
 0x25f   : > { %v760_v11 = vpop.xlane.xlu2 %759 }
 0x260   : > { %1563 = vrcp.f32 %v760_v11 }
 0x266   : > { %v1564_v12 = vpop.eup %1563 }
 0x267   : > { %v770_v13 = vmul.f32 %v1564_v12, %v1556_v61  ;;  %v754_v14 = vpop.xlane.xlu2 %753 }
 0x268   : > { %1565 = vrcp.f32 %v754_v14 }
 0x269   : > { %v774_v15 = vpack.c.bf16 %v770_v13, %v770_v13 }
 0x26b   : > { %1406 = vmatmul.msk.bf16.vlgmr.msra.gmra.mxu2 %vm651_vm2, %v774_v15 }
 0x26e   : > { %v1566_v16 = vpop.eup %1565 }
 0x26f   : > { %v768_v18 = vmul.f32 %v1566_v16, %v1558_v2  ;;  %v757_v19 = vpop.xlane.xlu2 %756 }
 0x270   : > { %1567 = vrcp.f32 %v757_v19 }
 0x271   : > { %v772_v20 = vpack.c.bf16 %v768_v18, %v768_v18 }
 0x273   : > { %1404 = vmatmul.msk.bf16.vlgmr.msrb.gmra.mxu0 %vm651_vm2, %v772_v20 }
 0x276   : > { %v1568_v21 = vpop.eup %1567 }
 0x277   : > { %v769_v22 = vmul.f32 %v1568_v21, %v1560_v4 }
 0x279   : > { %v773_v23 = vpack.c.bf16 %v769_v22, %v769_v22 }
 0x27b   : > { %1405 = vmatmul.msk.bf16.vlgmr.msra.gmra.mxu1 %vm651_vm2, %v773_v23 }
 0x2db   : > { %v845_v24 = vpop.f32.mrf.mxu3 }
 0x2dc   : > { %v861_v34 = vrot.slane %v845_v24, 4 }
 0x2e3   : > { %v847_v25 = vpop.f32.mrf.mxu3 }
 0x2ee   : > { %v827_v26 = vpop.f32.mrf.mxu2 }
 0x2ef   : > { %v849_v27 = vrot.slane %v827_v26, 4 }
 0x2f0   : > { %v791_v28 = vpop.f32.mrf.mxu0 }
 0x2f1   : > { %v851_v29 = vrot.slane %v791_v28, 4  ;;  %v850_v30 = vsel %vm526_vm1, %v849_v27, %v791_v28 }
 0x2f2   : > { %v856_v32 = vperm.slane %v850_v30, %v1871_v7 }
 0x2f3   : > { %v852_v31 = vsel %vm526_vm1, %v827_v26, %v851_v29 }
 0x2f4   : > { %v860_v35 = vperm.slane %v852_v31, %v1871_v7  ;;  %v875_v40 = vrot.slane %v856_v32, 4 }
 0x2f6   : > { %v829_v33 = vpop.f32.mrf.mxu2  ;;  %v887_v43 = vrot.slane %v860_v35, 4 }
 0x2f8   : > { %v793_v36 = vpop.f32.mrf.mxu0  ;;  %v809_v37 = vpop.f32.mrf.mxu1 }
 0x2f9   : > { %v862_v38 = vsel %vm526_vm1, %v861_v34, %v809_v37  ;;  %v863_v39 = vrot.slane %v809_v37, 4 }
 0x2fa   : > { %v868_v41 = vperm.slane %v862_v38, %v1871_v7 }
 0x2fb   : > { %v864_v42 = vsel %vm526_vm1, %v845_v24, %v863_v39  ;;  %v1681_v39 = vmov 32.0  }
 0x2fc   : > { %v872_v44 = vperm.slane %v864_v42, %v1871_v7  ;;  %v873_v45 = vrot.slane %v868_v41, 4  ;;  %v876_v46 = vsel %vm526_vm1, %v868_v41, %v875_v40  ;;  %1569 = vrcp.f32 %v1681_v39 }
 0x2fd   : > { %v884_v47 = vperm.slane %v876_v46, %v1878_v17 }
 0x2fe   : > { %v874_v48 = vsel %vm526_vm1, %v873_v45, %v856_v32  ;;  %v885_v49 = vrot.slane %v872_v44, 4  ;;  %v888_v50 = vsel %vm526_vm1, %v872_v44, %v887_v43 }
 0x2ff   : > { %v880_v51 = vperm.slane %v874_v48, %v1878_v17  ;;  %v896_v52 = vperm.slane %v888_v50, %v1878_v17  ;;  %v899_v53 = vrot.slane %v884_v47, 4  ;;  %v1457_v50 = vld [vmem:[%s1831_s26 + $0x8] sm:$0xff] }
 0x300   : > { %v886_v54 = vsel %vm526_vm1, %v885_v49, %v860_v35  ;;  %v811_v55 = vpop.f32.mrf.mxu1  ;;  %1047 = vmatpush.bf16.msra.mxu0 %v1457_v50 }
 0x301   : > { %v892_v56 = vperm.slane %v886_v54, %v1878_v17  ;;  %v897_v57 = vrot.slane %v880_v51, 4  ;;  %v900_v58 = vsel %vm526_vm1, 0.0, %v899_v53  ;;  %v903_v59 = vrot.slane %v896_v52, 4 }
 0x302   : > { %v905_v60 = vsel %vm526_vm1, %v899_v53, %v880_v51  ;;  %v910_v61 = vrot.slane %v900_v58, 4  ;;  %v1570_v40 = vpop.eup %1569  ;;  %v1456_v51 = vld [vmem:[%s1831_s26] sm:$0xff] }
 0x303   : > { %v898_v62 = vsel %vm526_vm1, 0.0, %v897_v57  ;;  %v901_v63 = vrot.slane %v892_v56, 4  ;;  %v904_v0 = vsel %vm526_vm1, 0.0, %v903_v59  ;;  %v909_v2 = vperm.slane %v905_v60, %v1871_v7 }
 0x304   : > { %v921_v3 = vrot.slane %v904_v0, 4  ;;  %v911_v4 = vsel %vm526_vm1, %v910_v61, %v898_v62  ;;  %v916_v5 = vsel %vm526_vm1, %v903_v59, %v892_v56  ;;  %v984_v41 = vmul.f32 32.0, %v1570_v40  ;;  %1048 = vmatpush.bf16.msra.mxu0 %v1456_v51  ;;  %v1547_v61 = vld [vmem:[%s495_s15] ss:$0 sm:$0xff]  ;;  %s1228_s15 = sshll.u32 %s469_s27, 4  ;;  %s1229_s15 = int_to_ptr.vmem [resolvable:$true] %s1228_s15 }
 0x305   : > { %v902_v6 = vsel %vm526_vm1, 0.0, %v901_v63  ;;  %v915_v8 = vperm.slane %v911_v4, %v1871_v7  ;;  %v920_v9 = vperm.slane %v916_v5, %v1871_v7  ;;  %v929_v10 = vrot.slane %v909_v2, 4  ;;  %v1548_v63 = vld [vmem:[%s498_s0] ss:$0 sm:$0xff]  ;;  %v1465_v5 = vld [vmem:[%s1845_s23 + $0x38] sm:$0xff] }
 0x306   : > { %v922_v11 = vsel %vm526_vm1, %v921_v3, %v902_v6  ;;  %v985_v42 = vsub.f32 1.0, %v984_v41  ;;  %vm988_vm7 = vweird.f32 %v1570_v40  ;;  %1167 = vmatpush.bf16.msrb.mxu1 %v1465_v5  ;;  %v1464_v6 = vld [vmem:[%s1845_s23 + $0x30] sm:$0xff] }
 0x307   : > { %v926_v12 = vperm.slane %v922_v11, %v1871_v7  ;;  %v930_v13 = vsel %vm526_vm1, %v915_v8, %v929_v10  ;;  %v941_v14 = vrot.slane %v920_v9, 4  ;;  %v927_v15 = vrot.slane %v915_v8, 4  ;;  %v1549_v8 = vld [vmem:[%s2138_s14] ss:$0 sm:$0xff]  ;;  %v1463_v10 = vld [vmem:[%s1845_s23 + $0x28] sm:$0xff] }
 0x308   : > { %v938_v16 = vperm.slane %v930_v13, %v1878_v17  ;;  %v986_v43 = vmul.f32 %v1570_v40, %v985_v42  ;;  %v1462_v13 = vld [vmem:[%s1845_s23 + $0x20] sm:$0xff] }
 0x309   : > { %v942_v18 = vsel %vm526_vm1, %v926_v12, %v941_v14  ;;  %v928_v19 = vsel %vm526_vm1, %v927_v15, %v909_v2  ;;  %v939_v20 = vrot.slane %v926_v12, 4 }
 0x30a   : > { %v950_v21 = vperm.slane %v942_v18, %v1878_v17  ;;  %v957_v22 = vrot.slane %v938_v16, 4  ;;  %v934_v23 = vperm.slane %v928_v19, %v1878_v17  ;;  %v987_v44 = vadd.f32 %v1570_v40, %v986_v43  ;;  %1168 = vmatpush.bf16.msrb.mxu1 %v1464_v6  ;;  %v1461_v18 = vld [vmem:[%s1845_s23 + $0x18] sm:$0xff] }
 0x30b   : > { %v940_v24 = vsel %vm526_vm1, %v939_v20, %v920_v9 }
 0x30c   : > { %v958_v7 = vsel %vm526_vm1, %v950_v21, %v957_v22  ;;  %v955_v25 = vrot.slane %v950_v21, 4  ;;  %v946_v26 = vperm.slane %v940_v24, %v1878_v17  ;;  %v953_v27 = vrot.slane %v934_v23, 4 }
 0x30d   : > { %968 = vrot.lane.b32.xlu0 %v958_v7, %s1678_s12  ;;  %v1988_v45 = vsel %vm988_vm7, %v1570_v40, %v987_v44 }
 0x30e   : > { %v956_v28 = vsel %vm526_vm1, %v955_v25, %v938_v16  ;;  %v951_v29 = vrot.slane %v946_v26, 4  ;;  %v954_v30 = vsel %vm526_vm1, %v946_v26, %v953_v27  ;;  %1169 = vmatpush.bf16.msrb.mxu1 %v1463_v10  ;;  %v1459_v25 = vld [vmem:[%s1845_s23 + $0x8] sm:$0xff] }
 0x30f   : > { %964 = vrot.lane.b32.xlu1 %v956_v28, %s1679_s24  ;;  %960 = vrot.lane.b32.xlu2 %v954_v30, %s1680_s22  ;;  %s2142_s22 = sld [smem:[#allocation20_spill]] }
 0x310   : > { %v952_v31 = vsel %vm526_vm1, %v951_v29, %v934_v23  ;;  %v1460_v23 = vld [vmem:[%s1845_s23 + $0x10] sm:$0xff]  ;;  %v1458_v29 = vld [vmem:[%s1845_s23] sm:$0xff] }
 0x312   : > { %1170 = vmatpush.bf16.msrb.mxu1 %v1462_v13 }
 0x315   : > { %s1226_s18 = scalar_lea.hbm %s2142_s22, %s1451_s28 }
 0x316   : > { %1171 = vmatpush.bf16.msrb.mxu1 %v1461_v18  ;;  %v1552_v18 = vld [vmem:[%s504_s17] ss:$0 sm:$0xff]  ;;  %s1230_s20 = sshll.u32 %s1226_s18, 4  ;;  %s1231_s20 = int_to_ptr.hbm [resolvable:$true] %s1230_s20 }
 0x317   : > { %s1591_s0 = sshra.s32 %s1231_s20, 4  ;;  %s1592_s0 = int_to_ptr.hbm [resolvable:$true] %s1591_s0 }
 0x318   : > { %s1593_s23 = scalar_lea.hbm %s1592_s0, 8  ;;  %p1598_p5 = scmp.lt.s32.totalorder %s1592_s0, %s2142_s22 }
 0x319   : > { %p1594_p1 = scmp.ne.s32.totalorder %s1592_s0, %s1593_s23 }
 0x31a   : > { %1172 = vmatpush.bf16.msrb.mxu1 %v1460_v23 }
 0x31b   : > { %p1595_p2 = pnand %p1594_p1, %p1786_p3 }
 0x31d   : > { %p1596_p4 = pneg %p1595_p2 }
 0x31e   : > { %1173 = vmatpush.bf16.msrb.mxu1 %v1459_v25 }
 0x322   : > { %1174 = vmatpush.bf16.msrb.mxu1 %v1458_v29 }
 0x369   : > { %v961_v32 = vpop.permute.xlu2 %960 }
 0x36a   : > { %v971_v33 = vsel %vm651_vm2, %v952_v31, %v961_v32 }
 0x37f   : > { %v969_v34 = vpop.permute.xlu0 %968 }
 0x381   : > { %v965_v17 = vpop.permute.xlu1 %964 }
 0x382   : > { %v973_v35 = vsel %vm972_vm4, %v971_v33, %v965_v17 }
 0x383   : > { %v975_v36 = vsel %vm974_vm5, %v973_v35, %v969_v34 }
 0x384   : > { %v976_v37 = vadd.f32 %v975_v36, %v1865_v1 }
 0x386   : > { %v980_v38 = vsel %vm979_vm6, %v976_v37, 0.0 }
 0x387   : > { %981 = vadd.xlane.f32.xlu2 %v980_v38 }
 0x3fa   : > { %v982_v46 = vpop.xlane.xlu2 %981 }
 0x3fb   : > { %v990_v47 = vmul.f32 %v1988_v45, %v982_v46 }
 0x3fd   : > { %v991_v48 = vsub.f32 %v976_v37, %v990_v47 }
 0x3ff   : > { %v992_v1 = vmul.f32 %v991_v48, %v991_v48 }
 0x401   : > { %v993_v49 = vsel %vm979_vm6, %v992_v1, 0.0 }
 0x402   : > { %994 = vadd.xlane.f32.xlu1 %v993_v49 }
 0x475   : > { %v995_v52 = vpop.xlane.xlu1 %994 }
 0x476   : > { %v996_v53 = vmul.f32 %v995_v52, %v1988_v45 }
 0x478   : > { %v997_v54 = vadd.f32 1e-05, %v996_v53 }
 0x47a   : > { %1571 = vrsqrt.f32 %v997_v54  ;;  %vm1004_vm9 = vweird.f32 %v997_v54 }
 0x480   : > { %v1572_v55 = vpop.eup %1571 }
 0x481   : > { %v999_v56 = vmul.f32 %v1572_v55, %v997_v54  ;;  %vm1005_vm8 = vweird.f32 %v1572_v55 }
 0x482   : > { %vm1006_vm10 = vmor %vm1004_vm9, %vm1005_vm8 }
 0x483   : > { %v1000_v57 = vmul.f32 %v1572_v55, %v999_v56 }
 0x485   : > { %v1001_v58 = vmul.f32 0.5, %v1000_v57  ;;  %v1550_v57 = vld [vmem:[%s2139_s10] ss:$0 sm:$0xff]  ;;  %s1597_s10 = scalar_lea.hbm %s2142_s22, 16 }
 0x486   : > { %p1599_p6 = scmp.lt.s32.totalorder %s1597_s10, %s1593_s23 }
 0x487   : > { %v1002_v59 = vsub.f32 1.5, %v1001_v58 }
 0x488   : > { %p1600_p7 = por %p1599_p6, %p1598_p5 }
 0x489   : > { %v1003_v60 = vmul.f32 %v1572_v55, %v1002_v59 }
 0x48a   : > { %p1601_p8 = pnand %p1600_p7, %p1596_p4 }
 0x48b   : > { %v1007_v62 = vsel %vm1006_vm10, %v1572_v55, %v1003_v60 }
 0x48c   : > { %v1008_v0 = vmul.f32 %v1007_v62, %v991_v48 }
 0x48e   : > { %v1012_v2 = vmul.f32 %v1547_v61, %v1008_v0 }
 0x490   : > { %v2005_v3 = vadd.f32 %v1548_v63, %v1012_v2 }
 0x492   : > { %v1017_v4 = vpack.c.bf16 %v2005_v3, %v2005_v3 }
 0x494   : > { %1416 = vmatmul.msk.bf16.vlgmr.msra.gmra.mxu0 %vm979_vm6, %v1017_v4 }
 0x511   : > { %v1050_v9 = vpop.f32.mrf.mxu0 }
 0x512   : > { %v1051_v11 = vadd.f32 %v1549_v8, %v1050_v9 }
 0x514   : > { %v1055_v12 = vmul.f32 0.70710677, %v1051_v11  ;;  %v1054_v53 = vmul.f32 0.5, %v1051_v11 }
 0x516   : > { %v1056_v14 = vmul.f32 %v1055_v12, %v1055_v12 }
 0x518   : > { %v1057_v15 = vmin.f32 %v1056_v14, 16.0 }
 0x519   : > { %v1052_v16 = vpop.f32.mrf.mxu0 }
 0x51a   : > { %v1058_v19 = vmul.f32 2.1237322e-06, %v1057_v15  ;;  %v1069_v20 = vmul.f32 3.8918573e-05, %v1057_v15 }
 0x51c   : > { %v1059_v21 = vadd.f32 0.00028619796, %v1058_v19  ;;  %v1070_v22 = vadd.f32 0.001143296, %v1069_v20 }
 0x51e   : > { %v1060_v24 = vmul.f32 %v1059_v21, %v1057_v15  ;;  %v1071_v7 = vmul.f32 %v1070_v22, %v1057_v15 }
 0x520   : > { %v1072_v26 = vadd.f32 0.014752088, %v1071_v7  ;;  %v1061_v27 = vadd.f32 0.0036580483, %v1060_v24 }
 0x522   : > { %v1073_v28 = vmul.f32 %v1072_v26, %v1057_v15  ;;  %v1062_v31 = vmul.f32 %v1061_v27, %v1057_v15 }
 0x524   : > { %v1074_v30 = vadd.f32 0.112945676, %v1073_v28  ;;  %v1063_v17 = vadd.f32 0.05243302, %v1062_v31 }
 0x526   : > { %v1075_v32 = vmul.f32 %v1074_v30, %v1057_v15  ;;  %v1064_v36 = vmul.f32 %v1063_v17, %v1057_v15 }
 0x528   : > { %v1076_v33 = vadd.f32 0.4994258, %v1075_v32  ;;  %v1065_v37 = vadd.f32 0.18741608, %v1064_v36 }
 0x52a   : > { %v1077_v34 = vmul.f32 %v1076_v33, %v1057_v15  ;;  %v1066_v39 = vmul.f32 %v1065_v37, %v1057_v15 }
 0x52c   : > { %v1078_v35 = vadd.f32 1.0, %v1077_v34  ;;  %v1067_v43 = vadd.f32 1.1283791, %v1066_v39 }
 0x52e   : > { %1573 = vrcp.f32 %v1078_v35  ;;  %v1090_v42 = vand.u32 2147483648, %v1078_v35  ;;  %v1088_v46 = vand.u32 2147483647, %v1078_v35  ;;  %vm1084_vm12 = vweird.f32 %v1078_v35 }
 0x52f   : > { %v1068_v1 = vmul.f32 %v1067_v43, %v1055_v12 }
 0x530   : > { %v1091_v48 = vor.u32 1.1754944e-38, %v1090_v42  ;;  %vm1089_vm14 = vcmp.eq.f32.partialorder %v1088_v46, 8.507059e+37 }
 0x534   : > { %v1574_v38 = vpop.eup %1573 }
 0x535   : > { %v1080_v40 = vmul.f32 %v1574_v38, %v1078_v35  ;;  %vm1085_vm11 = vweird.f32 %v1574_v38 }
 0x536   : > { %vm1086_vm13 = vmor %vm1084_vm12, %vm1085_vm11 }
 0x537   : > { %v1081_v41 = vsub.f32 1.0, %v1080_v40 }
 0x539   : > { %v1082_v44 = vmul.f32 %v1574_v38, %v1081_v41 }
 0x53b   : > { %v1083_v47 = vadd.f32 %v1574_v38, %v1082_v44 }
 0x53d   : > { %v1087_v49 = vsel %vm1086_vm13, %v1574_v38, %v1083_v47 }
 0x53e   : > { %v1092_v50 = vsel %vm1089_vm14, %v1091_v48, %v1087_v49 }
 0x53f   : > { %v1093_v51 = vmul.f32 %v1092_v50, %v1068_v1 }
 0x541   : > { %v1417_v52 = vclamps-f32 %v1093_v51, 1.0 }
 0x543   : > { %v1096_v54 = vadd.f32 1.0, %v1417_v52 }
 0x545   : > { %v1097_v55 = vmul.f32 %v1096_v54, %v1054_v53 }
 0x547   : > { %v1098_v56 = vpack.c.bf16 %v1097_v55, %v1097_v55 }
 0x549   : > { %1175 = vmatmul.bf16.vlgmr.msrb.gmra.mxu1 %v1098_v56 }
 0x5c6   : > { %v1176_v58 = vpop.f32.mrf.mxu1 }
 0x5c7   : > { %v1177_v59 = vadd.f32 %v1550_v57, %v1176_v58 }
 0x5c9   : > { %v1180_v60 = vadd.f32 %v1177_v59, %v2005_v3 }
 0x5cb   : > { %v1183_v61 = vsel %vm979_vm6, %v1180_v60, 0.0 }
 0x5cc   : > { %1184 = vadd.xlane.f32.xlu0 %v1183_v61 }
 0x5ce   : > { %v1178_v62 = vpop.f32.mrf.mxu1 }
 0x63f   : > { %v1185_v63 = vpop.xlane.xlu0 %1184 }
 0x640   : > { %v1186_v0 = vmul.f32 %v1185_v63, %v1988_v45 }
 0x642   : > { %v1187_v2 = vsub.f32 %v1180_v60, %v1186_v0 }
 0x644   : > { %v1188_v4 = vmul.f32 %v1187_v2, %v1187_v2 }
 0x646   : > { %v1189_v5 = vsel %vm979_vm6, %v1188_v4, 0.0 }
 0x647   : > { %1190 = vadd.xlane.f32.xlu2 %v1189_v5 }
 0x6ba   : > { %v1191_v6 = vpop.xlane.xlu2 %1190 }
 0x6bb   : > { %v1192_v8 = vmul.f32 %v1191_v6, %v1988_v45  ;;  %v1551_v45 = vld [vmem:[%s501_s25] ss:$0 sm:$0xff]  ;;  %s2144_s25 = sand.u32 1, %s2141_s2  }
 0x6bc   : > { %s1216_s14 = scalar_lea.sflag [#allocation4], %s2144_s25 }
 0x6bd   : > { %v1193_v9 = vadd.f32 1e-05, %v1192_v8 }
 0x6bf   : > { %1575 = vrsqrt.f32 %v1193_v9  ;;  %vm1200_vm0 = vweird.f32 %v1193_v9 }
 0x6c5   : > { %v1576_v3 = vpop.eup %1575 }
 0x6c6   : > { %v1195_v10 = vmul.f32 %v1576_v3, %v1193_v9  ;;  %vm1201_vm15 = vweird.f32 %v1576_v3 }
 0x6c7   : > { %vm1202_vm1 = vmor %vm1200_vm0, %vm1201_vm15 }
 0x6c8   : > { %v1196_v11 = vmul.f32 %v1576_v3, %v1195_v10 }
 0x6ca   : > { %v1197_v12 = vmul.f32 0.5, %v1196_v11 }
 0x6cc   : > { %v1198_v13 = vsub.f32 1.5, %v1197_v12 }
 0x6ce   : > { %v1199_v14 = vmul.f32 %v1576_v3, %v1198_v13 }
 0x6d0   : > { %v1203_v15 = vsel %vm1202_vm1, %v1576_v3, %v1199_v14 }
 0x6d1   : > { %v1204_v16 = vmul.f32 %v1203_v15, %v1187_v2 }
 0x6d3   : > { %v1208_v19 = vmul.f32 %v1551_v45, %v1204_v16 }
 0x6d5   : > { %v1212_v20 = vadd.f32 %v1552_v18, %v1208_v19 }
 0x6d7   : > { %1213 = vst.msk [vmem:[#allocation2] sm:$0xff] %vm979_vm6, %v1212_v20 }
 0x6d8   : > { %1214 = vst.msk [vmem:[%s469_s27] sm:$0xff] %vm979_vm6, %v1212_v20 }
 0x6d9   : > { %1604 = shalt.err (!%p1601_p8)
}
 0x6da   : > { %1466 = dma.vmem_to_hbm [thread:$0]  (%p1786_p3), %s1229_s15, 128, %s1231_s20, %s1216_s14  }
 0x6db PF: > { %s2145_s11 = sld [smem:[#allocation12_spill]] }
 0x6dc   : > { %s2146_s27 = sld [smem:[#allocation6_spill]] }
 0x6e1   : > { %p1472_p10 = scmp.ge.s32.totalorder %s2145_s11, 2 }
 0x6e2   : > { %s1242_s16 = sand.u32 1, %s2146_s27  }
 0x6e3   : > { %p1469_p11 = pnand %p1472_p10, %p1796_p9  ;;  %s1243_s19 = scalar_lea.sflag [#allocation4], %s1242_s16 }
 0x6e5   : > { %p1470_p12 = pneg %p1469_p11 }
 0x6e7   : > { %1638 = dma.done.wait (%p1470_p12), %s1243_s19, 128  }
 0x6e8   : > { %1640 = vsyncadd (%p1470_p12), %s1243_s19, 4294967168  ;;  %s23_s20 = sadd.s32 1, %s2145_s11   ;;  %s2148_s13 = sld [smem:[#allocation7_spill]] }
 0x6e9   : > { %p20_p13 = scmp.ge.s32.totalorder %s23_s20, 6   ;;  %s2149_s14 = sld [smem:[#allocation8_spill]] }
 0x6ea   : > { %s2150_s15 = sld [smem:[#allocation17_spill]] }
 0x6eb   : > { %s2151_s16 = sld [smem:[#allocation10_spill]]  ;;  %22 = sbr.rel (!%p20_p13) target bundleno = 9 (0x9), region = 126 }
 0x6ec   : > { %s2152_s17 = sld [smem:[#allocation11_spill]] }
 0x6ed   : > { %s2153_s18 = sld [smem:[#allocation13_spill]] }
 0x6ee   : > { %s2154_s19 = sld [smem:[#allocation15_spill]] }
 0x6f0   :  { %1249 = vsyncpa [#allocation4], 1 }
 0x6f1   :  { %1251 = vsyncpa [#allocation4 + $0x1], 1 }

</bundles_post_ra>
